<compile_context>
chip_gen: v5e
topology: v5e:2x2
jax: 0.10.0
libtpu: 0.0.40
codegen_flags: <defaults>
</compile_context>

<pallas_src>
import functools

import jax
import jax.numpy as jnp
from jax import lax
from jax.experimental import pallas as pl
from jax.experimental.pallas import tpu as pltpu

NEG_SLOPE = 0.2
BN_EPS = 1e-5
CLAMP_MIN = 1e-9
NEG_BIG = -1e30


def _leaky_relu(x, slope=NEG_SLOPE):
    return jnp.where(x >= 0, x, slope * x)


def _onehot_masks_t(src_row, dst_row, n_nodes_pad, tile_e):
    """Transposed one-hot masks (Npad, TE) for one edge tile, built in-register.

    src_row/dst_row are (1, TE) int32 node ids broadcast along sublanes; padded
    edges carry an out-of-range id, so their columns are all-zero (no extra
    validity mask needed).  The node-iota is built once and shared."""
    row = lax.broadcasted_iota(jnp.int32, (n_nodes_pad, tile_e), 0)
    oh_src_t = (row == src_row).astype(jnp.float32)
    oh_dst_t = (row == dst_row).astype(jnp.float32)
    return oh_src_t, oh_dst_t


# ----------------------------------------------------------------------------
# Kernel A: fused node projection (one matmul for attn_src / prop_src / attn_dst
#           / apply_dst instead of four narrow ones).
# ----------------------------------------------------------------------------
def _node_proj_kernel(fs_ref, w_cat_ref, b_apply_dst_ref, proj_ref, apply_dst_ref, *, h3):
    cat = jnp.dot(fs_ref[...], w_cat_ref[...], preferred_element_type=jnp.float32)
    proj_ref[...] = cat[:, :h3]                              # [attn_src | prop_src | attn_dst]
    apply_dst_ref[...] = cat[:, h3:] + b_apply_dst_ref[...]  # apply_dst_fc(feat_dst)


# ----------------------------------------------------------------------------
# Kernel BC (fused): per-edge logits (u_add_v + edge term + leaky_relu), online
#           global per-head max, and per-dst / per-src exp-sum denominators
#           rescaled flash-style; finalized to node-level reciprocals.
# ----------------------------------------------------------------------------
def _edge_logit_denom_kernel(src_ref, dst_ref, fe_ref, node_proj_ref, w_attn_edge_ref,
                             gmax_ref, inv_dst_ref, inv_src_ref,
                             *, n_head, n_nodes_pad, tile_e):
    t = pl.program_id(0)
    h = n_head

    @pl.when(t == 0)
    def _():
        gmax_ref[...] = jnp.full(gmax_ref.shape, NEG_BIG, jnp.float32)
        inv_dst_ref[...] = jnp.zeros_like(inv_dst_ref)
        inv_src_ref[...] = jnp.zeros_like(inv_src_ref)

    oh_src_t, oh_dst_t = _onehot_masks_t(src_ref[...], dst_ref[...], n_nodes_pad, tile_e)

    tab = node_proj_ref[...]                                   # (Npad, 3H) [attn_src|prop_src|attn_dst]
    dn_g = (((0,), (0,)), ((), ()))                            # gather: contract the node axis
    g_src = lax.dot_general(oh_src_t, tab, dn_g, preferred_element_type=jnp.float32)  # (TE, 3H)
    g_dst = lax.dot_general(oh_dst_t, tab, dn_g, preferred_element_type=jnp.float32)  # (TE, 3H)
    attn_edge = jnp.dot(fe_ref[...], w_attn_edge_ref[...], preferred_element_type=jnp.float32)
    logit = _leaky_relu(g_src[:, :h] + g_dst[:, 2 * h:] + attn_edge)                  # (TE, H)

    # online (flash-style) running per-head max; rescale accumulators when it moves
    m_old = gmax_ref[...]
    m_new = jnp.maximum(m_old, jnp.max(logit, axis=0, keepdims=True))
    scale = jnp.exp(m_old - m_new)
    exp_e = jnp.exp(logit - m_new)                             # padded-edge columns of oh_* are zero
    gmax_ref[...] = m_new
    inv_dst_ref[...] = inv_dst_ref[...] * scale + jnp.dot(
        oh_dst_t, exp_e, preferred_element_type=jnp.float32)
    inv_src_ref[...] = inv_src_ref[...] * scale + jnp.dot(
        oh_src_t, exp_e, preferred_element_type=jnp.float32)

    @pl.when(t == pl.num_programs(0) - 1)
    def _():
        # N*H reciprocals once, gathered per edge in pass D (instead of E*H divides)
        inv_dst_ref[...] = pl.reciprocal(jnp.maximum(inv_dst_ref[...], 1e-30))
        inv_src_ref[...] = pl.reciprocal(jnp.maximum(inv_src_ref[...], 1e-30))


# ----------------------------------------------------------------------------
# Kernel D: both_softmax attention, u_mul_e message, scatter-add to dst, and
#           fused one-pass BatchNorm batch statistics on the last edge tile.
# ----------------------------------------------------------------------------
def _edge_attn_scatter_kernel(src_ref, dst_ref, fe_ref, src_tab_ref, dst_tab_ref,
                              w_attn_edge_ref, gmax_ref, msg_sum_ref, stats_ref,
                              *, n_head, n_nodes_pad, n_nodes, tile_e):
    t = pl.program_id(0)
    h = n_head

    @pl.when(t == 0)
    def _():
        msg_sum_ref[...] = jnp.zeros_like(msg_sum_ref)
        stats_ref[...] = jnp.zeros_like(stats_ref)

    oh_src_t, oh_dst_t = _onehot_masks_t(src_ref[...], dst_ref[...], n_nodes_pad, tile_e)

    dn_g = (((0,), (0,)), ((), ()))
    g_src = lax.dot_general(oh_src_t, src_tab_ref[...], dn_g,
                            preferred_element_type=jnp.float32)  # (TE, 3H) [attn_src|prop_src|inv_src]
    g_dst = lax.dot_general(oh_dst_t, dst_tab_ref[...], dn_g,
                            preferred_element_type=jnp.float32)  # (TE, 2H) [attn_dst|inv_dst]
    attn_edge = jnp.dot(fe_ref[...], w_attn_edge_ref[...], preferred_element_type=jnp.float32)
    logit = _leaky_relu(g_src[:, :h] + g_dst[:, :h] + attn_edge)
    exp_e = jnp.exp(logit - gmax_ref[...])
    # both_softmax: sqrt(softmax_by_dst.clamp(1e-9) * softmax_by_src.clamp(1e-9))
    a = jnp.sqrt(jnp.maximum(exp_e * g_dst[:, h:], CLAMP_MIN) *
                 jnp.maximum(exp_e * g_src[:, 2 * h:], CLAMP_MIN))
    msg = a * g_src[:, h:2 * h]                                  # u_mul_e with prop_src_fc[src]
    msg_sum_ref[...] += jnp.dot(oh_dst_t, msg, preferred_element_type=jnp.float32)

    @pl.when(t == pl.num_programs(0) - 1)
    def _():
        # one-pass training-mode BatchNorm1d statistics (padded node rows are exactly 0)
        ms = msg_sum_ref[...]
        mean = jnp.sum(ms, axis=0, keepdims=True) * (1.0 / n_nodes)
        var = jnp.sum(ms * ms, axis=0, keepdims=True) * (1.0 / n_nodes) - mean * mean
        stats_ref[...] = jnp.concatenate([mean, var], axis=0)    # (2, H)


# ----------------------------------------------------------------------------
# Kernel E: BN apply + agg_fc + apply_dst residual + leaky_relu + apply_fc.
# ----------------------------------------------------------------------------
def _node_out_kernel(msg_ref, stats_ref, gamma_ref, beta_ref,
                     w_agg_ref, b_agg_ref, apply_dst_ref, w_apply_ref, b_apply_ref,
                     out_ref):
    stats = stats_ref[...]
    mean, var = stats[0:1, :], stats[1:2, :]
    hbn = (msg_ref[...] - mean) * lax.rsqrt(var + BN_EPS)
    hbn = hbn * gamma_ref[...] + beta_ref[...]
    rst = jnp.dot(hbn, w_agg_ref[...], preferred_element_type=jnp.float32) + b_agg_ref[...]
    rst = rst + apply_dst_ref[...]
    rst = _leaky_relu(rst)
    out_ref[...] = (jnp.dot(rst, w_apply_ref[...], preferred_element_type=jnp.float32)
                    + b_apply_ref[...])


# ----------------------------------------------------------------------------
# Wrapper
# ----------------------------------------------------------------------------
def gipa_deep_conv(feat_src, feat_edge, src_idx, dst_idx, params,
                   *, node_tile=256, edge_tile=256):
    n_nodes, node_feats = feat_src.shape
    n_edges, edge_feats = feat_edge.shape
    n_head = params["w_attn_src"].shape[1]
    out_feats = params["w_apply"].shape[1]
    h3 = 3 * n_head

    n_pad = ((n_nodes + node_tile - 1) // node_tile) * node_tile
    e_pad = ((n_edges + edge_tile - 1) // edge_tile) * edge_tile
    n_grid = n_pad // node_tile
    e_grid = e_pad // edge_tile

    fs = jnp.pad(feat_src, ((0, n_pad - n_nodes), (0, 0)))
    fe = jnp.pad(feat_edge, ((0, e_pad - n_edges), (0, 0)))
    # lane-dense (e_grid, edge_tile) int32 index rows; padded edges carry an
    # out-of-range node id (n_pad) so their in-kernel one-hot columns are zero.
    src = (jnp.full((e_pad,), n_pad, jnp.int32)
           .at[:n_edges].set(src_idx.astype(jnp.int32)).reshape(e_grid, edge_tile))
    dst = (jnp.full((e_pad,), n_pad, jnp.int32)
           .at[:n_edges].set(dst_idx.astype(jnp.int32)).reshape(e_grid, edge_tile))

    # Fused node-side weight: [attn_src | prop_src | attn_dst | apply_dst]
    w_cat = jnp.concatenate([params["w_attn_src"], params["w_prop_src"],
                             params["w_attn_dst"], params["w_apply_dst"]], axis=1)

    parallel = pltpu.CompilerParams(dimension_semantics=("parallel",))
    arbitrary = pltpu.CompilerParams(dimension_semantics=("arbitrary",))

    # --- A: fused node projections ---------------------------------------------
    node_proj, apply_dst = pl.pallas_call(
        functools.partial(_node_proj_kernel, h3=h3),
        grid=(n_grid,),
        in_specs=[
            pl.BlockSpec((node_tile, node_feats), lambda i: (i, 0)),
            pl.BlockSpec((node_feats, h3 + out_feats), lambda i: (0, 0)),
            pl.BlockSpec((1, out_feats), lambda i: (0, 0)),
        ],
        out_specs=(
            pl.BlockSpec((node_tile, h3), lambda i: (i, 0)),
            pl.BlockSpec((node_tile, out_feats), lambda i: (i, 0)),
        ),
        out_shape=(
            jax.ShapeDtypeStruct((n_pad, h3), jnp.float32),
            jax.ShapeDtypeStruct((n_pad, out_feats), jnp.float32),
        ),
        compiler_params=parallel,
    )(fs, w_cat, params["b_apply_dst"])

    # --- BC: edge logits + online max + softmax denominators -> reciprocals ----
    gmax, inv_dst, inv_src = pl.pallas_call(
        functools.partial(_edge_logit_denom_kernel, n_head=n_head,
                          n_nodes_pad=n_pad, tile_e=edge_tile),
        grid=(e_grid,),
        in_specs=[
            pl.BlockSpec((1, edge_tile), lambda i: (i, 0)),
            pl.BlockSpec((1, edge_tile), lambda i: (i, 0)),
            pl.BlockSpec((edge_tile, edge_feats), lambda i: (i, 0)),
            pl.BlockSpec((n_pad, h3), lambda i: (0, 0)),
            pl.BlockSpec((edge_feats, n_head), lambda i: (0, 0)),
        ],
        out_specs=(
            pl.BlockSpec((1, n_head), lambda i: (0, 0)),
            pl.BlockSpec((n_pad, n_head), lambda i: (0, 0)),
            pl.BlockSpec((n_pad, n_head), lambda i: (0, 0)),
        ),
        out_shape=(
            jax.ShapeDtypeStruct((1, n_head), jnp.float32),
            jax.ShapeDtypeStruct((n_pad, n_head), jnp.float32),
            jax.ShapeDtypeStruct((n_pad, n_head), jnp.float32),
        ),
        compiler_params=arbitrary,
    )(src, dst, fe, node_proj, params["w_attn_edge"])

    # Fused per-node gather tables for pass D (cheap host-side concat of tiny tables).
    src_tab = jnp.concatenate([node_proj[:, :2 * n_head], inv_src], axis=1)   # [attn_src|prop_src|inv_src]
    dst_tab = jnp.concatenate([node_proj[:, 2 * n_head:], inv_dst], axis=1)   # [attn_dst|inv_dst]

    # --- D: attention + message scatter-add + BN statistics --------------------
    msg_sum, bn_stats = pl.pallas_call(
        functools.partial(_edge_attn_scatter_kernel, n_head=n_head, n_nodes_pad=n_pad,
                          n_nodes=n_nodes, tile_e=edge_tile),
        grid=(e_grid,),
        in_specs=[
            pl.BlockSpec((1, edge_tile), lambda i: (i, 0)),
            pl.BlockSpec((1, edge_tile), lambda i: (i, 0)),
            pl.BlockSpec((edge_tile, edge_feats), lambda i: (i, 0)),
            pl.BlockSpec((n_pad, h3), lambda i: (0, 0)),
            pl.BlockSpec((n_pad, 2 * n_head), lambda i: (0, 0)),
            pl.BlockSpec((edge_feats, n_head), lambda i: (0, 0)),
            pl.BlockSpec((1, n_head), lambda i: (0, 0)),
        ],
        out_specs=(
            pl.BlockSpec((n_pad, n_head), lambda i: (0, 0)),
            pl.BlockSpec((2, n_head), lambda i: (0, 0)),
        ),
        out_shape=(
            jax.ShapeDtypeStruct((n_pad, n_head), jnp.float32),
            jax.ShapeDtypeStruct((2, n_head), jnp.float32),
        ),
        compiler_params=arbitrary,
    )(src, dst, fe, src_tab, dst_tab, params["w_attn_edge"], gmax)

    # --- E: BN apply + output FCs -----------------------------------------------
    out = pl.pallas_call(
        _node_out_kernel,
        grid=(n_grid,),
        in_specs=[
            pl.BlockSpec((node_tile, n_head), lambda i: (i, 0)),
            pl.BlockSpec((2, n_head), lambda i: (0, 0)),
            pl.BlockSpec((1, n_head), lambda i: (0, 0)),
            pl.BlockSpec((1, n_head), lambda i: (0, 0)),
            pl.BlockSpec((n_head, out_feats), lambda i: (0, 0)),
            pl.BlockSpec((1, out_feats), lambda i: (0, 0)),
            pl.BlockSpec((node_tile, out_feats), lambda i: (i, 0)),
            pl.BlockSpec((out_feats, out_feats), lambda i: (0, 0)),
            pl.BlockSpec((1, out_feats), lambda i: (0, 0)),
        ],
        out_specs=pl.BlockSpec((node_tile, out_feats), lambda i: (i, 0)),
        out_shape=jax.ShapeDtypeStruct((n_pad, out_feats), jnp.float32),
        compiler_params=parallel,
    )(msg_sum, bn_stats, params["bn_gamma"], params["bn_beta"],
      params["w_agg"], params["b_agg"], apply_dst, params["w_apply"], params["b_apply"])

    return out[:n_nodes]


# ----------------------------------------------------------------------------
# Pure-JAX reference (DGL-faithful per-group-max edge_softmax) for correctness.
# ----------------------------------------------------------------------------
def _edge_softmax_ref(logits, seg, n):
    m = jax.ops.segment_max(logits, seg, num_segments=n)
    z = jnp.exp(logits - m[seg])
    s = jax.ops.segment_sum(z, seg, num_segments=n)
    return z / s[seg]


def gipa_deep_conv_ref(feat_src, feat_edge, src_idx, dst_idx, params):
    fs, fe = feat_src, feat_edge
    n = fs.shape[0]
    attn_src = fs @ params["w_attn_src"]
    attn_dst = fs @ params["w_attn_dst"]
    feat_src_fc = fs @ params["w_prop_src"]
    attn_edge = fe @ params["w_attn_edge"]
    e = _leaky_relu(attn_src[src_idx] + attn_dst[dst_idx] + attn_edge)
    a = jnp.sqrt(jnp.maximum(_edge_softmax_ref(e, dst_idx, n), CLAMP_MIN) *
                 jnp.maximum(_edge_softmax_ref(e, src_idx, n), CLAMP_MIN))
    msg_sum = jax.ops.segment_sum(a * feat_src_fc[src_idx], dst_idx, num_segments=n)
    mean = jnp.mean(msg_sum, axis=0, keepdims=True)
    var = jnp.mean((msg_sum - mean) ** 2, axis=0, keepdims=True)
    h = (msg_sum - mean) / jnp.sqrt(var + BN_EPS)
    h = h * params["bn_gamma"] + params["bn_beta"]
    rst = h @ params["w_agg"] + params["b_agg"]
    rst = rst + fs @ params["w_apply_dst"] + params["b_apply_dst"]
    rst = _leaky_relu(rst)
    return rst @ params["w_apply"] + params["b_apply"]


def _xavier_normal(key, fan_in, fan_out, gain):
    std = gain * (2.0 / (fan_in + fan_out)) ** 0.5
    return std * jax.random.normal(key, (fan_in, fan_out), dtype=jnp.float32)


def _linear_bias(key, fan_in, fan_out):
    bound = 1.0 / (fan_in ** 0.5)
    return jax.random.uniform(key, (1, fan_out), jnp.float32, -bound, bound)


if __name__ == "__main__":
    # small shapes implied by the module: node_feats, edge_feats, n_head, out_feats
    N, E = 50, 600                     # exercises node padding and 3 edge tiles (online max path)
    node_feats, edge_feats, n_head, out_feats = 32, 8, 4, 16
    gain = 2.0 ** 0.5                  # calculate_gain('relu')

    key = jax.random.PRNGKey(0)
    ks = jax.random.split(key, 16)

    feat_src = jax.random.normal(ks[0], (N, node_feats), jnp.float32)
    feat_edge = jax.random.normal(ks[1], (E, edge_feats), jnp.float32)
    src_idx = jax.random.randint(ks[2], (E,), 0, N)
    dst_idx = jax.random.randint(ks[3], (E,), 0, N)

    params = {
        "w_prop_src": _xavier_normal(ks[4], node_feats, n_head, gain),
        "w_attn_src": _xavier_normal(ks[5], node_feats, n_head, gain),
        "w_attn_dst": _xavier_normal(ks[6], node_feats, n_head, gain),
        "w_attn_edge": _xavier_normal(ks[7], edge_feats, n_head, gain),
        "bn_gamma": jnp.ones((1, n_head), jnp.float32),   # BatchNorm1d default weight
        "bn_beta": jnp.zeros((1, n_head), jnp.float32),   # BatchNorm1d default bias
        "w_agg": _xavier_normal(ks[8], n_head, out_feats, gain),
        "b_agg": _linear_bias(ks[9], n_head, out_feats),
        "w_apply_dst": _xavier_normal(ks[10], node_feats, out_feats, gain),
        "b_apply_dst": _linear_bias(ks[11], node_feats, out_feats),
        "w_apply": _xavier_normal(ks[12], out_feats, out_feats, gain),
        "b_apply": _linear_bias(ks[13], out_feats, out_feats),
    }

    out = gipa_deep_conv(feat_src, feat_edge, src_idx, dst_idx, params)
    out = jax.block_until_ready(out)

    ref = gipa_deep_conv_ref(feat_src, feat_edge, src_idx, dst_idx, params)
    ref = jax.block_until_ready(ref)

    assert out.shape == (N, out_feats)
    assert bool(jnp.all(jnp.isfinite(out)))
    assert bool(jnp.allclose(out, ref, atol=1e-3, rtol=1e-3)), float(jnp.max(jnp.abs(out - ref)))
    print("KERNEL_OK")
</pallas_src>

<mosaic_0001>
module attributes {stable_mosaic.version = 11 : i64} {
  func.func @_node_proj_kernel(%arg0: i32, %arg1: memref<256x32xf32, #tpu.memory_space<vmem>>, %arg2: memref<32x28xf32, #tpu.memory_space<vmem>>, %arg3: memref<1x16xf32, #tpu.memory_space<vmem>>, %arg4: memref<256x12xf32, #tpu.memory_space<vmem>>, %arg5: memref<256x16xf32, #tpu.memory_space<vmem>>) attributes {dimension_semantics = [#tpu.dimension_semantics<parallel>], iteration_bounds = array<i64: 1>, scalar_prefetch = 0 : i64, scratch_operands = 0 : i64, tpu.core_type = #tpu.core_type<tc>, window_params = [{transform_indices = @transform_0, window_bounds = array<i64: 256, 32>}, {pipeline_mode = #tpu.pipeline_mode<synchronous>, transform_indices = @transform_1, window_bounds = array<i64: 32, 28>}, {pipeline_mode = #tpu.pipeline_mode<synchronous>, transform_indices = @transform_2, window_bounds = array<i64: 1, 16>}, {transform_indices = @transform_3, window_bounds = array<i64: 256, 12>}, {transform_indices = @transform_4, window_bounds = array<i64: 256, 16>}]} {
    %c0 = arith.constant 0 : index
    %c0_0 = arith.constant 0 : index
    %0 = vector.load %arg1[%c0, %c0_0] : memref<256x32xf32, #tpu.memory_space<vmem>>, vector<256x32xf32>
    %c0_1 = arith.constant 0 : index
    %c0_2 = arith.constant 0 : index
    %1 = vector.load %arg2[%c0_1, %c0_2] : memref<32x28xf32, #tpu.memory_space<vmem>>, vector<32x28xf32>
    %cst = arith.constant dense<0.000000e+00> : vector<256x28xf32>
    %2 = tpu.matmul %0, %1, %cst {dimension_numbers = #tpu.dot_dimension_numbers<[1], [0], [0], [1], [0, 0, 1, 1], [], []>} : vector<256x32xf32>, vector<32x28xf32>, vector<256x28xf32> -> vector<256x28xf32>
    %3 = vector.extract_strided_slice %2 {offsets = [0, 0], sizes = [256, 12], strides = [1, 1]} : vector<256x28xf32> to vector<256x12xf32>
    %c0_3 = arith.constant 0 : index
    %c0_4 = arith.constant 0 : index
    %4 = vector.load %arg4[%c0_3, %c0_4] : memref<256x12xf32, #tpu.memory_space<vmem>>, vector<256x12xf32>
    tpu.vector_store %arg4[%c0_3, %c0_4], %3 {strides = array<i32>} : memref<256x12xf32, #tpu.memory_space<vmem>>, vector<256x12xf32>,
    %5 = vector.extract_strided_slice %2 {offsets = [0, 12], sizes = [256, 16], strides = [1, 1]} : vector<256x28xf32> to vector<256x16xf32>
    %c0_5 = arith.constant 0 : index
    %c0_6 = arith.constant 0 : index
    %6 = vector.load %arg3[%c0_5, %c0_6] : memref<1x16xf32, #tpu.memory_space<vmem>>, vector<1x16xf32>
    %7 = vector.broadcast %6 : vector<1x16xf32> to vector<256x16xf32>
    %8 = arith.addf %5, %7 : vector<256x16xf32>
    %c0_7 = arith.constant 0 : index
    %c0_8 = arith.constant 0 : index
    %9 = vector.load %arg5[%c0_7, %c0_8] : memref<256x16xf32, #tpu.memory_space<vmem>>, vector<256x16xf32>
    tpu.vector_store %arg5[%c0_7, %c0_8], %8 {strides = array<i32>} : memref<256x16xf32, #tpu.memory_space<vmem>>, vector<256x16xf32>,
    return
  }
  func.func @transform_0(%arg0: i32) -> (i32, i32) {
    %c0_i32 = arith.constant 0 : i32
    %c0_i32_0 = arith.constant 0 : i32
    return %arg0, %c0_i32 : i32, i32
  }
  func.func @transform_1(%arg0: i32) -> (i32, i32) {
    %c0_i32 = arith.constant 0 : i32
    %c0_i32_0 = arith.constant 0 : i32
    %c0_i32_1 = arith.constant 0 : i32
    return %c0_i32, %c0_i32_0 : i32, i32
  }
  func.func @transform_2(%arg0: i32) -> (i32, i32) {
    %c0_i32 = arith.constant 0 : i32
    %c0_i32_0 = arith.constant 0 : i32
    %c0_i32_1 = arith.constant 0 : i32
    return %c0_i32, %c0_i32_0 : i32, i32
  }
  func.func @transform_3(%arg0: i32) -> (i32, i32) {
    %c0_i32 = arith.constant 0 : i32
    %c0_i32_0 = arith.constant 0 : i32
    return %arg0, %c0_i32 : i32, i32
  }
  func.func @transform_4(%arg0: i32) -> (i32, i32) {
    %c0_i32 = arith.constant 0 : i32
    %c0_i32_0 = arith.constant 0 : i32
    return %arg0, %c0_i32 : i32, i32
  }
}

</mosaic_0001>

<bundles_post_ra>
// kernel: tpu_custom_call.1
= control target key start
LH: loop header
LB: loop body
LE: loop exit
PB: predicated region body
PF: predicated region fallthrough
CT: control target
= control target key end

     0   :  { %vm52_vm0 = vcmask 261120   ;;  %s549_s6 = smov 12   ;;  %vm262_vm1 = vcmask 97280   ;;  %s550_s10 = smov 116   ;;  %vm461_vm2 = vcmask 130048   ;;  %s1041_s1 = inlined_call_operand.vmem [shape: f32[32,28], index: 1, kind: input, shape index: {}]   ;;  %s1042_s0 = inlined_call_operand.vmem [shape: f32[256,32], index: 0, kind: input, shape index: {}]   ;;  %s1043_s2 = inlined_call_operand.vmem [shape: f32[1,16], index: 2, kind: input, shape index: {}]   ;;  %s1044_s3 = inlined_call_operand.vmem [shape: f32[256,12], index: 3, kind: output, shape index: {0}]   ;;  %s1045_s4 = inlined_call_operand.vmem [shape: f32[256,16], index: 4, kind: output, shape index: {1}]  }
   0x1   :  { %v51_v0 = vld [vmem:[%s1041_s1 + $0x18] sm:$0xff]  ;;  %v50_v1 = vld [vmem:[%s1041_s1 + $0x10] sm:$0xff]  ;;  %v49_v2 = vld [vmem:[%s1041_s1 + $0x8] sm:$0xff] }
   0x2   :  { %161 = vmatpush.msra.mxu0 %v51_v0  ;;  %534 = vmatpush.msra.mxu1 %v51_v0  ;;  %v48_v3 = vld [vmem:[%s1041_s1] sm:$0xff]  ;;  %v17_v9 = vld [vmem:[%s1042_s0 + $0x8] sm:$0xff]  ;;  %v18_v13 = vld [vmem:[%s1042_s0 + $0x10] sm:$0xff] }
   0x3   :  { %535 = vmatpush.msra.mxu2 %v51_v0  ;;  %536 = vmatpush.msra.mxu3 %v51_v0  ;;  %v16_v4 = vld [vmem:[%s1042_s0] sm:$0xff]  ;;  %v25_v10 = vld [vmem:[%s1042_s0 + $0x48] sm:$0xff]  ;;  %v26_v14 = vld [vmem:[%s1042_s0 + $0x50] sm:$0xff] }
   0x4   :  { %162 = vmatpush.msra.mxu0 %v50_v1  ;;  %537 = vmatpush.msra.mxu1 %v50_v1  ;;  %v24_v5 = vld [vmem:[%s1042_s0 + $0x40] sm:$0xff]  ;;  %v33_v11 = vld [vmem:[%s1042_s0 + $0x88] sm:$0xff]  ;;  %v34_v15 = vld [vmem:[%s1042_s0 + $0x90] sm:$0xff] }
   0x5   :  { %538 = vmatpush.msra.mxu2 %v50_v1  ;;  %539 = vmatpush.msra.mxu3 %v50_v1  ;;  %v32_v6 = vld [vmem:[%s1042_s0 + $0x80] sm:$0xff]  ;;  %v41_v12 = vld [vmem:[%s1042_s0 + $0xc8] sm:$0xff]  ;;  %v42_v16 = vld [vmem:[%s1042_s0 + $0xd0] sm:$0xff] }
   0x6   :  { %163 = vmatpush.msra.mxu0 %v49_v2  ;;  %540 = vmatpush.msra.mxu1 %v49_v2  ;;  %v40_v7 = vld [vmem:[%s1042_s0 + $0xc0] sm:$0xff]  ;;  %v19_v17 = vld [vmem:[%s1042_s0 + $0x18] sm:$0xff]  ;;  %v21_v25 = vld [vmem:[%s1042_s0 + $0x28] sm:$0xff] }
   0x7   :  { %541 = vmatpush.msra.mxu2 %v49_v2  ;;  %542 = vmatpush.msra.mxu3 %v49_v2  ;;  %v548_v8 = vld [vmem:[%s1043_s2] ss:$0 sm:$0xff]  ;;  %v27_v18 = vld [vmem:[%s1042_s0 + $0x58] sm:$0xff]  ;;  %v29_v26 = vld [vmem:[%s1042_s0 + $0x68] sm:$0xff] }
   0x8   :  { %164 = vmatpush.msra.mxu0 %v48_v3  ;;  %543 = vmatpush.msra.mxu1 %v48_v3  ;;  %v35_v19 = vld [vmem:[%s1042_s0 + $0x98] sm:$0xff]  ;;  %v20_v21 = vld [vmem:[%s1042_s0 + $0x20] sm:$0xff]  ;;  %v37_v27 = vld [vmem:[%s1042_s0 + $0xa8] sm:$0xff] }
   0x9   :  { %544 = vmatpush.msra.mxu2 %v48_v3  ;;  %545 = vmatpush.msra.mxu3 %v48_v3  ;;  %v43_v20 = vld [vmem:[%s1042_s0 + $0xd8] sm:$0xff]  ;;  %v28_v22 = vld [vmem:[%s1042_s0 + $0x60] sm:$0xff]  ;;  %v45_v28 = vld [vmem:[%s1042_s0 + $0xe8] sm:$0xff] }
   0xa   :  { %502 = vmatmul.msk.f32.vlgmr.msra.gmra.mxu0 %vm52_vm0, %v16_v4  ;;  %510 = vmatmul.msk.f32.vlgmr.msra.gmra.mxu1 %vm52_vm0, %v24_v5  ;;  %v36_v23 = vld [vmem:[%s1042_s0 + $0xa0] sm:$0xff]  ;;  %v22_v29 = vld [vmem:[%s1042_s0 + $0x30] sm:$0xff]  ;;  %v23_v33 = vld [vmem:[%s1042_s0 + $0x38] sm:$0xff] }
   0xb   :  { %518 = vmatmul.msk.f32.vlgmr.msra.gmra.mxu2 %vm52_vm0, %v32_v6  ;;  %526 = vmatmul.msk.f32.vlgmr.msra.gmra.mxu3 %vm52_vm0, %v40_v7  ;;  %v44_v24 = vld [vmem:[%s1042_s0 + $0xe0] sm:$0xff]  ;;  %v30_v30 = vld [vmem:[%s1042_s0 + $0x70] sm:$0xff]  ;;  %v31_v34 = vld [vmem:[%s1042_s0 + $0x78] sm:$0xff] }
   0xc   :  { %298 = vrot.lane.b32.xlu0 %v548_v8, %s549_s6  ;;  %v38_v31 = vld [vmem:[%s1042_s0 + $0xb0] sm:$0xff]  ;;  %v39_v35 = vld [vmem:[%s1042_s0 + $0xb8] sm:$0xff] }
   0xd   :  { %v46_v32 = vld [vmem:[%s1042_s0 + $0xf0] sm:$0xff]  ;;  %v47_v36 = vld [vmem:[%s1042_s0 + $0xf8] sm:$0xff] }
  0x12   :  { %503 = vmatmul.msk.f32.gmra.mxu0 %vm52_vm0, %v17_v9  ;;  %511 = vmatmul.msk.f32.gmra.mxu1 %vm52_vm0, %v25_v10 }
  0x13   :  { %519 = vmatmul.msk.f32.gmra.mxu2 %vm52_vm0, %v33_v11  ;;  %527 = vmatmul.msk.f32.gmra.mxu3 %vm52_vm0, %v41_v12 }
  0x1a   :  { %504 = vmatmul.msk.f32.gmra.mxu0 %vm52_vm0, %v18_v13  ;;  %512 = vmatmul.msk.f32.gmra.mxu1 %vm52_vm0, %v26_v14 }
  0x1b   :  { %520 = vmatmul.msk.f32.gmra.mxu2 %vm52_vm0, %v34_v15  ;;  %528 = vmatmul.msk.f32.gmra.mxu3 %vm52_vm0, %v42_v16 }
  0x22   :  { %505 = vmatmul.msk.f32.gmra.mxu0 %vm52_vm0, %v19_v17  ;;  %513 = vmatmul.msk.f32.gmra.mxu1 %vm52_vm0, %v27_v18 }
  0x23   :  { %521 = vmatmul.msk.f32.gmra.mxu2 %vm52_vm0, %v35_v19  ;;  %529 = vmatmul.msk.f32.gmra.mxu3 %vm52_vm0, %v43_v20 }
  0x2a   :  { %506 = vmatmul.msk.f32.gmra.mxu0 %vm52_vm0, %v20_v21  ;;  %514 = vmatmul.msk.f32.gmra.mxu1 %vm52_vm0, %v28_v22 }
  0x2b   :  { %522 = vmatmul.msk.f32.gmra.mxu2 %vm52_vm0, %v36_v23  ;;  %530 = vmatmul.msk.f32.gmra.mxu3 %vm52_vm0, %v44_v24 }
  0x32   :  { %507 = vmatmul.msk.f32.gmra.mxu0 %vm52_vm0, %v21_v25  ;;  %515 = vmatmul.msk.f32.gmra.mxu1 %vm52_vm0, %v29_v26 }
  0x33   :  { %523 = vmatmul.msk.f32.gmra.mxu2 %vm52_vm0, %v37_v27  ;;  %531 = vmatmul.msk.f32.gmra.mxu3 %vm52_vm0, %v45_v28 }
  0x3a   :  { %508 = vmatmul.msk.f32.gmra.mxu0 %vm52_vm0, %v22_v29  ;;  %516 = vmatmul.msk.f32.gmra.mxu1 %vm52_vm0, %v30_v30 }
  0x3b   :  { %524 = vmatmul.msk.f32.gmra.mxu2 %vm52_vm0, %v38_v31  ;;  %532 = vmatmul.msk.f32.gmra.mxu3 %vm52_vm0, %v46_v32 }
  0x42   :  { %509 = vmatmul.msk.f32.gmra.mxu0 %vm52_vm0, %v23_v33  ;;  %517 = vmatmul.msk.f32.gmra.mxu1 %vm52_vm0, %v31_v34 }
  0x43   :  { %525 = vmatmul.msk.f32.gmra.mxu2 %vm52_vm0, %v39_v35  ;;  %533 = vmatmul.msk.f32.gmra.mxu3 %vm52_vm0, %v47_v36 }
  0x7e   :  { %v719_v37 = vpop.permute.xlu0 %298 }
  0x87   :  { %v166_v38 = vpop.f32.mrf.mxu0  ;;  %v190_v39 = vpop.f32.mrf.mxu1 }
  0x88   :  { %263 = vst.msk [vmem:[%s1044_s3] sm:$0xff] %vm262_vm1, %v166_v38  ;;  %v301_v40 = vadd.f32 %v719_v37, %v166_v38  ;;  %v309_v47 = vadd.f32 %v719_v37, %v190_v39 }
  0x89   :  { %271 = vst.msk [vmem:[%s1044_s3 + $0x40] sm:$0xff] %vm262_vm1, %v190_v39 }
  0x8a   :  { %365 = vrot.lane.b32.xlu0 %v301_v40, %s550_s10 }
  0x8e   :  { %v214_v41 = vpop.f32.mrf.mxu2  ;;  %v238_v42 = vpop.f32.mrf.mxu3 }
  0x8f   :  { %279 = vst.msk [vmem:[%s1044_s3 + $0x80] sm:$0xff] %vm262_vm1, %v214_v41  ;;  %v169_v43 = vpop.f32.mrf.mxu0  ;;  %v193_v44 = vpop.f32.mrf.mxu1  ;;  %v325_v45 = vadd.f32 %v719_v37, %v238_v42  ;;  %v317_v46 = vadd.f32 %v719_v37, %v214_v41 }
  0x90   :  { %287 = vst.msk [vmem:[%s1044_s3 + $0xc0] sm:$0xff] %vm262_vm1, %v238_v42  ;;  %v302_v50 = vadd.f32 %v719_v37, %v169_v43  ;;  %v310_v57 = vadd.f32 %v719_v37, %v193_v44 }
  0x91   :  { %264 = vst.msk [vmem:[%s1044_s3 + $0x8] sm:$0xff] %vm262_vm1, %v169_v43  ;;  %413 = vrot.lane.b32.xlu1 %v325_v45, %s550_s10  ;;  %397 = vrot.lane.b32.xlu2 %v317_v46, %s550_s10 }
  0x92   :  { %272 = vst.msk [vmem:[%s1044_s3 + $0x48] sm:$0xff] %vm262_vm1, %v193_v44  ;;  %381 = vrot.lane.b32.xlu0 %v309_v47, %s550_s10 }
  0x96   :  { %v217_v48 = vpop.f32.mrf.mxu2  ;;  %v241_v49 = vpop.f32.mrf.mxu3 }
  0x97   :  { %280 = vst.msk [vmem:[%s1044_s3 + $0x88] sm:$0xff] %vm262_vm1, %v217_v48  ;;  %v326_v51 = vadd.f32 %v719_v37, %v241_v49  ;;  %v172_v52 = vpop.f32.mrf.mxu0  ;;  %v196_v53 = vpop.f32.mrf.mxu1  ;;  %v318_v54 = vadd.f32 %v719_v37, %v217_v48 }
  0x98   :  { %288 = vst.msk [vmem:[%s1044_s3 + $0xc8] sm:$0xff] %vm262_vm1, %v241_v49  ;;  %v311_v58 = vadd.f32 %v719_v37, %v196_v53  ;;  %v303_v0 = vadd.f32 %v719_v37, %v172_v52 }
  0x99   :  { %265 = vst.msk [vmem:[%s1044_s3 + $0x10] sm:$0xff] %vm262_vm1, %v172_v52  ;;  %415 = vrot.lane.b32.xlu2 %v326_v51, %s550_s10  ;;  %367 = vrot.lane.b32.xlu1 %v302_v50, %s550_s10 }
  0x9a   :  { %273 = vst.msk [vmem:[%s1044_s3 + $0x50] sm:$0xff] %vm262_vm1, %v196_v53  ;;  %399 = vrot.lane.b32.xlu0 %v318_v54, %s550_s10 }
  0x9e   :  { %v220_v55 = vpop.f32.mrf.mxu2  ;;  %v244_v56 = vpop.f32.mrf.mxu3 }
  0x9f   :  { %281 = vst.msk [vmem:[%s1044_s3 + $0x90] sm:$0xff] %vm262_vm1, %v220_v55  ;;  %v175_v59 = vpop.f32.mrf.mxu0  ;;  %v199_v60 = vpop.f32.mrf.mxu1  ;;  %v327_v61 = vadd.f32 %v719_v37, %v244_v56  ;;  %v319_v7 = vadd.f32 %v719_v37, %v220_v55 }
  0xa0   :  { %289 = vst.msk [vmem:[%s1044_s3 + $0xd0] sm:$0xff] %vm262_vm1, %v244_v56  ;;  %v304_v1 = vadd.f32 %v719_v37, %v175_v59  ;;  %v312_v4 = vadd.f32 %v719_v37, %v199_v60 }
  0xa1   :  { %266 = vst.msk [vmem:[%s1044_s3 + $0x18] sm:$0xff] %vm262_vm1, %v175_v59  ;;  %385 = vrot.lane.b32.xlu2 %v311_v58, %s550_s10  ;;  %383 = vrot.lane.b32.xlu1 %v310_v57, %s550_s10 }
  0xa2   :  { %274 = vst.msk [vmem:[%s1044_s3 + $0x58] sm:$0xff] %vm262_vm1, %v199_v60  ;;  %417 = vrot.lane.b32.xlu0 %v327_v61, %s550_s10 }
  0xa6   :  { %v223_v62 = vpop.f32.mrf.mxu2  ;;  %v247_v63 = vpop.f32.mrf.mxu3 }
  0xa7   :  { %282 = vst.msk [vmem:[%s1044_s3 + $0x98] sm:$0xff] %vm262_vm1, %v223_v62  ;;  %v178_v2 = vpop.f32.mrf.mxu0  ;;  %v202_v3 = vpop.f32.mrf.mxu1  ;;  %v320_v8 = vadd.f32 %v719_v37, %v223_v62  ;;  %v328_v14 = vadd.f32 %v719_v37, %v247_v63 }
  0xa8   :  { %290 = vst.msk [vmem:[%s1044_s3 + $0xd8] sm:$0xff] %vm262_vm1, %v247_v63  ;;  %v305_v15 = vadd.f32 %v719_v37, %v178_v2  ;;  %v313_v21 = vadd.f32 %v719_v37, %v202_v3 }
  0xa9   :  { %267 = vst.msk [vmem:[%s1044_s3 + $0x20] sm:$0xff] %vm262_vm1, %v178_v2  ;;  %369 = vrot.lane.b32.xlu1 %v303_v0, %s550_s10  ;;  %371 = vrot.lane.b32.xlu2 %v304_v1, %s550_s10 }
  0xaa   :  { %275 = vst.msk [vmem:[%s1044_s3 + $0x60] sm:$0xff] %vm262_vm1, %v202_v3  ;;  %387 = vrot.lane.b32.xlu0 %v312_v4, %s550_s10 }
  0xae   :  { %v226_v5 = vpop.f32.mrf.mxu2  ;;  %v250_v6 = vpop.f32.mrf.mxu3 }
  0xaf   :  { %283 = vst.msk [vmem:[%s1044_s3 + $0xa0] sm:$0xff] %vm262_vm1, %v226_v5  ;;  %v181_v9 = vpop.f32.mrf.mxu0  ;;  %v205_v10 = vpop.f32.mrf.mxu1  ;;  %v321_v11 = vadd.f32 %v719_v37, %v226_v5  ;;  %v329_v22 = vadd.f32 %v719_v37, %v250_v6 }
  0xb0   :  { %291 = vst.msk [vmem:[%s1044_s3 + $0xe0] sm:$0xff] %vm262_vm1, %v250_v6  ;;  %v306_v18 = vadd.f32 %v719_v37, %v181_v9  ;;  %v314_v27 = vadd.f32 %v719_v37, %v205_v10 }
  0xb1   :  { %268 = vst.msk [vmem:[%s1044_s3 + $0x28] sm:$0xff] %vm262_vm1, %v181_v9  ;;  %401 = vrot.lane.b32.xlu1 %v319_v7, %s550_s10  ;;  %403 = vrot.lane.b32.xlu2 %v320_v8, %s550_s10 }
  0xb2   :  { %276 = vst.msk [vmem:[%s1044_s3 + $0x68] sm:$0xff] %vm262_vm1, %v205_v10  ;;  %405 = vrot.lane.b32.xlu0 %v321_v11, %s550_s10 }
  0xb6   :  { %v229_v12 = vpop.f32.mrf.mxu2  ;;  %v253_v13 = vpop.f32.mrf.mxu3 }
  0xb7   :  { %284 = vst.msk [vmem:[%s1044_s3 + $0xa8] sm:$0xff] %vm262_vm1, %v229_v12  ;;  %v184_v16 = vpop.f32.mrf.mxu0  ;;  %v208_v17 = vpop.f32.mrf.mxu1  ;;  %v322_v28 = vadd.f32 %v719_v37, %v229_v12  ;;  %v330_v33 = vadd.f32 %v719_v37, %v253_v13 }
  0xb8   :  { %292 = vst.msk [vmem:[%s1044_s3 + $0xe8] sm:$0xff] %vm262_vm1, %v253_v13  ;;  %v315_v23 = vadd.f32 %v719_v37, %v208_v17  ;;  %v307_v31 = vadd.f32 %v719_v37, %v184_v16 }
  0xb9   :  { %269 = vst.msk [vmem:[%s1044_s3 + $0x30] sm:$0xff] %vm262_vm1, %v184_v16  ;;  %419 = vrot.lane.b32.xlu1 %v328_v14, %s550_s10  ;;  %373 = vrot.lane.b32.xlu2 %v305_v15, %s550_s10 }
  0xba   :  { %277 = vst.msk [vmem:[%s1044_s3 + $0x70] sm:$0xff] %vm262_vm1, %v208_v17  ;;  %375 = vrot.lane.b32.xlu0 %v306_v18, %s550_s10 }
  0xbe   :  { %v232_v19 = vpop.f32.mrf.mxu2  ;;  %v256_v20 = vpop.f32.mrf.mxu3 }
  0xbf   :  { %285 = vst.msk [vmem:[%s1044_s3 + $0xb0] sm:$0xff] %vm262_vm1, %v232_v19  ;;  %v187_v24 = vpop.f32.mrf.mxu0  ;;  %v211_v25 = vpop.f32.mrf.mxu1  ;;  %v323_v32 = vadd.f32 %v719_v37, %v232_v19  ;;  %v331_v36 = vadd.f32 %v719_v37, %v256_v20 }
  0xc0   :  { %293 = vst.msk [vmem:[%s1044_s3 + $0xf0] sm:$0xff] %vm262_vm1, %v256_v20  ;;  %v308_v34 = vadd.f32 %v719_v37, %v187_v24  ;;  %v316_v35 = vadd.f32 %v719_v37, %v211_v25 }
  0xc1   :  { %270 = vst.msk [vmem:[%s1044_s3 + $0x38] sm:$0xff] %vm262_vm1, %v187_v24  ;;  %389 = vrot.lane.b32.xlu1 %v313_v21, %s550_s10  ;;  %421 = vrot.lane.b32.xlu2 %v329_v22, %s550_s10 }
  0xc2   :  { %278 = vst.msk [vmem:[%s1044_s3 + $0x78] sm:$0xff] %vm262_vm1, %v211_v25  ;;  %393 = vrot.lane.b32.xlu0 %v315_v23, %s550_s10 }
  0xc6   :  { %v235_v26 = vpop.f32.mrf.mxu2  ;;  %v259_v29 = vpop.f32.mrf.mxu3 }
  0xc7   :  { %286 = vst.msk [vmem:[%s1044_s3 + $0xb8] sm:$0xff] %vm262_vm1, %v235_v26  ;;  %v324_v30 = vadd.f32 %v719_v37, %v235_v26  ;;  %v332_v38 = vadd.f32 %v719_v37, %v259_v29 }
  0xc8   :  { %294 = vst.msk [vmem:[%s1044_s3 + $0xf8] sm:$0xff] %vm262_vm1, %v259_v29 }
  0xc9   :  { %407 = vrot.lane.b32.xlu1 %v322_v28, %s550_s10  ;;  %391 = vrot.lane.b32.xlu2 %v314_v27, %s550_s10 }
  0xca   :  { %411 = vrot.lane.b32.xlu0 %v324_v30, %s550_s10 }
  0xd1   :  { %409 = vrot.lane.b32.xlu2 %v323_v32, %s550_s10  ;;  %377 = vrot.lane.b32.xlu1 %v307_v31, %s550_s10 }
  0xd2   :  { %423 = vrot.lane.b32.xlu0 %v330_v33, %s550_s10 }
  0xd9   :  { %395 = vrot.lane.b32.xlu1 %v316_v35, %s550_s10  ;;  %379 = vrot.lane.b32.xlu2 %v308_v34, %s550_s10 }
  0xe1   :  { %425 = vrot.lane.b32.xlu1 %v331_v36, %s550_s10  ;;  %427 = vrot.lane.b32.xlu2 %v332_v38, %s550_s10 }
  0xeb   :  { %v398_v39 = vpop.permute.xlu2 %397 }
  0xec   :  { %478 = vst.msk [vmem:[%s1045_s4 + $0x80] sm:$0xff] %vm461_vm2, %v398_v39 }
  0xf3   :  { %v416_v40 = vpop.permute.xlu2 %415 }
  0xf4   :  { %487 = vst.msk [vmem:[%s1045_s4 + $0xc8] sm:$0xff] %vm461_vm2, %v416_v40 }
  0xfb   :  { %v386_v41 = vpop.permute.xlu2 %385 }
  0xfc   :  { %472 = vst.msk [vmem:[%s1045_s4 + $0x50] sm:$0xff] %vm461_vm2, %v386_v41  ;;  %v366_v37 = vpop.permute.xlu0 %365 }
  0xfd   :  { %462 = vst.msk [vmem:[%s1045_s4] sm:$0xff] %vm461_vm2, %v366_v37 }
 0x103   :  { %v414_v42 = vpop.permute.xlu1 %413  ;;  %v372_v43 = vpop.permute.xlu2 %371 }
 0x104   :  { %486 = vst.msk [vmem:[%s1045_s4 + $0xc0] sm:$0xff] %vm461_vm2, %v414_v42  ;;  %v382_v44 = vpop.permute.xlu0 %381 }
 0x105   :  { %465 = vst.msk [vmem:[%s1045_s4 + $0x18] sm:$0xff] %vm461_vm2, %v372_v43 }
 0x106   :  { %470 = vst.msk [vmem:[%s1045_s4 + $0x40] sm:$0xff] %vm461_vm2, %v382_v44 }
 0x10b   :  { %v368_v45 = vpop.permute.xlu1 %367  ;;  %v404_v46 = vpop.permute.xlu2 %403 }
 0x10c   :  { %463 = vst.msk [vmem:[%s1045_s4 + $0x8] sm:$0xff] %vm461_vm2, %v368_v45  ;;  %v400_v47 = vpop.permute.xlu0 %399 }
 0x10d   :  { %481 = vst.msk [vmem:[%s1045_s4 + $0x98] sm:$0xff] %vm461_vm2, %v404_v46 }
 0x10e   :  { %479 = vst.msk [vmem:[%s1045_s4 + $0x88] sm:$0xff] %vm461_vm2, %v400_v47 }
 0x113   :  { %v384_v48 = vpop.permute.xlu1 %383  ;;  %v374_v49 = vpop.permute.xlu2 %373 }
 0x114   :  { %471 = vst.msk [vmem:[%s1045_s4 + $0x48] sm:$0xff] %vm461_vm2, %v384_v48  ;;  %v418_v50 = vpop.permute.xlu0 %417 }
 0x115   :  { %466 = vst.msk [vmem:[%s1045_s4 + $0x20] sm:$0xff] %vm461_vm2, %v374_v49 }
 0x116   :  { %488 = vst.msk [vmem:[%s1045_s4 + $0xd0] sm:$0xff] %vm461_vm2, %v418_v50 }
 0x11b   :  { %v370_v51 = vpop.permute.xlu1 %369  ;;  %v422_v52 = vpop.permute.xlu2 %421 }
 0x11c   :  { %464 = vst.msk [vmem:[%s1045_s4 + $0x10] sm:$0xff] %vm461_vm2, %v370_v51  ;;  %v388_v53 = vpop.permute.xlu0 %387 }
 0x11d   :  { %490 = vst.msk [vmem:[%s1045_s4 + $0xe0] sm:$0xff] %vm461_vm2, %v422_v52 }
 0x11e   :  { %473 = vst.msk [vmem:[%s1045_s4 + $0x58] sm:$0xff] %vm461_vm2, %v388_v53 }
 0x123   :  { %v402_v54 = vpop.permute.xlu1 %401  ;;  %v392_v55 = vpop.permute.xlu2 %391 }
 0x124   :  { %480 = vst.msk [vmem:[%s1045_s4 + $0x90] sm:$0xff] %vm461_vm2, %v402_v54  ;;  %v406_v56 = vpop.permute.xlu0 %405 }
 0x125   :  { %475 = vst.msk [vmem:[%s1045_s4 + $0x68] sm:$0xff] %vm461_vm2, %v392_v55 }
 0x126   :  { %482 = vst.msk [vmem:[%s1045_s4 + $0xa0] sm:$0xff] %vm461_vm2, %v406_v56 }
 0x12b   :  { %v420_v57 = vpop.permute.xlu1 %419  ;;  %v410_v58 = vpop.permute.xlu2 %409 }
 0x12c   :  { %489 = vst.msk [vmem:[%s1045_s4 + $0xd8] sm:$0xff] %vm461_vm2, %v420_v57  ;;  %v376_v59 = vpop.permute.xlu0 %375 }
 0x12d   :  { %484 = vst.msk [vmem:[%s1045_s4 + $0xb0] sm:$0xff] %vm461_vm2, %v410_v58 }
 0x12e   :  { %467 = vst.msk [vmem:[%s1045_s4 + $0x28] sm:$0xff] %vm461_vm2, %v376_v59 }
 0x133   :  { %v390_v60 = vpop.permute.xlu1 %389  ;;  %v380_v61 = vpop.permute.xlu2 %379 }
 0x134   :  { %474 = vst.msk [vmem:[%s1045_s4 + $0x60] sm:$0xff] %vm461_vm2, %v390_v60  ;;  %v394_v62 = vpop.permute.xlu0 %393 }
 0x135   :  { %469 = vst.msk [vmem:[%s1045_s4 + $0x38] sm:$0xff] %vm461_vm2, %v380_v61 }
 0x136   :  { %476 = vst.msk [vmem:[%s1045_s4 + $0x70] sm:$0xff] %vm461_vm2, %v394_v62 }
 0x13b   :  { %v408_v63 = vpop.permute.xlu1 %407  ;;  %v428_v0 = vpop.permute.xlu2 %427 }
 0x13c   :  { %483 = vst.msk [vmem:[%s1045_s4 + $0xa8] sm:$0xff] %vm461_vm2, %v408_v63  ;;  %v412_v1 = vpop.permute.xlu0 %411 }
 0x13d   :  { %493 = vst.msk [vmem:[%s1045_s4 + $0xf8] sm:$0xff] %vm461_vm2, %v428_v0 }
 0x13e   :  { %485 = vst.msk [vmem:[%s1045_s4 + $0xb8] sm:$0xff] %vm461_vm2, %v412_v1 }
 0x143   :  { %v378_v2 = vpop.permute.xlu1 %377 }
 0x144   :  { %468 = vst.msk [vmem:[%s1045_s4 + $0x30] sm:$0xff] %vm461_vm2, %v378_v2  ;;  %v424_v3 = vpop.permute.xlu0 %423 }
 0x145   :  { %491 = vst.msk [vmem:[%s1045_s4 + $0xe8] sm:$0xff] %vm461_vm2, %v424_v3 }
 0x14b   :  { %v396_v4 = vpop.permute.xlu1 %395 }
 0x14c   :  { %477 = vst.msk [vmem:[%s1045_s4 + $0x78] sm:$0xff] %vm461_vm2, %v396_v4 }
 0x153   :  { %v426_v5 = vpop.permute.xlu1 %425 }
 0x154   :  { %492 = vst.msk [vmem:[%s1045_s4 + $0xf0] sm:$0xff] %vm461_vm2, %v426_v5 }

</bundles_post_ra>
